<compile_context>
chip_gen: v7x
topology: tpu7x:2x2x1
jax: 0.10.0
libtpu: 0.0.40
codegen_flags: <defaults>
</compile_context>

<pallas_src>
import functools
import math

import jax
import jax.numpy as jnp
from jax import lax
from jax.experimental import pallas as pl
from jax.experimental.pallas import tpu as pltpu


def _round_up(v, m):
    return (v + m - 1) // m * m


# ----------------------------------------------------------------------------
# Pallas kernel: fused Parzen-window expansion + joint-histogram accumulation
# ----------------------------------------------------------------------------

def _parzen_joint_hist_kernel(x_ref, y_ref, bins_ref, hist_ref, *,
                              inv_two_sigma_sq, window_dtype):
    """One (split, batch, sample-tile) grid step.

    x_ref, y_ref : (1, TP)  f32 intensity samples for this batch / tile.
    bins_ref     : (B, 1)   f32 histogram bin centers.
    hist_ref     : (B, B)   f32 joint histogram; resident accumulator across
                            the sample-tile (last, "arbitrary") grid axis.
    """
    k = pl.program_id(2)

    @pl.when(k == 0)
    def _init():
        hist_ref[...] = jnp.zeros_like(hist_ref)

    x = x_ref[...]                        # (1, TP)
    y = y_ref[...]                        # (1, TP)
    bins = bins_ref[...]                  # (B, 1)

    # (B, TP): bins on sublanes, samples on lanes.
    # The 1/(sqrt(2 pi) sigma) factor is applied outside the kernel as
    # win_scale**2 on the histogram; padded samples are a sentinel far past
    # vmax, so exp underflows to exactly 0 — no mask needed.
    dx = x - bins
    dy = y - bins
    win_x = jnp.exp(dx * dx * (-inv_two_sigma_sq))
    win_y = jnp.exp(dy * dy * (-inv_two_sigma_sq))

    if window_dtype != jnp.float32:       # optional bf16 MXU inputs (v6e/v7x)
        win_x = win_x.astype(window_dtype)
        win_y = win_y.astype(window_dtype)

    # hist += win_x @ win_y^T, contracting over the sample (lane) axis.
    # TODO(synk): if a bundle dump shows the XLU transpose of win_y binding at
    # very large TP, build win_y pre-transposed as (TP, B) instead.
    hist_ref[...] += lax.dot_general(
        win_x, win_y, (((1,), (1,)), ((), ())),
        preferred_element_type=jnp.float32)


def parzen_joint_hist(x, y, bins, *, sigma, vmax, tile_p=4096, sample_split=1,
                      window_dtype=jnp.float32):
    """x, y: (N, P) f32; bins: (B,) f32 -> (N, B, B) joint hist (unscaled:
    missing the win_scale**2 Gaussian normalisation, applied by the caller)."""
    n, p = x.shape
    num_bins = bins.shape[0]

    tp = min(tile_p, _round_up(p, 128))
    p_pad = _round_up(p, tp * sample_split)
    if p_pad != p:
        # Sentinel padding: (sentinel - bin)^2 / (2 sigma^2) >= 5000 for every
        # bin, so exp(-...) is exactly 0.0 in f32 and padded columns add 0.
        sentinel = vmax + 100.0 * sigma
        x = jnp.pad(x, ((0, 0), (0, p_pad - p)), constant_values=sentinel)
        y = jnp.pad(y, ((0, 0), (0, p_pad - p)), constant_values=sentinel)
    x3 = x.reshape(n, 1, p_pad)
    y3 = y.reshape(n, 1, p_pad)
    bins2 = bins.reshape(num_bins, 1).astype(jnp.float32)

    k_steps = p_pad // (tp * sample_split)

    kernel = functools.partial(
        _parzen_joint_hist_kernel,
        inv_two_sigma_sq=1.0 / (2.0 * sigma * sigma),
        window_dtype=window_dtype)

    # Only raise the scoped-VMEM limit if a very large tile would exceed the
    # v5e default (16 MiB); typical tiles (TP <= 8K) stay well under it.
    win_bytes = num_bins * tp * jnp.dtype(window_dtype).itemsize
    est_vmem = (2 * 2 * tp * 4                      # x, y double-buffered tiles
                + 2 * num_bins * num_bins * 4       # resident + staged hist
                + 4 * win_bytes)                    # win_x, win_y + MXU staging
    vmem_limit = None
    if est_vmem > 14 * 1024 * 1024:
        vmem_limit = min(2 * est_vmem, 100 * 1024 * 1024)

    hist_parts = pl.pallas_call(
        kernel,
        out_shape=jax.ShapeDtypeStruct(
            (sample_split, n, num_bins, num_bins), jnp.float32),
        grid=(sample_split, n, k_steps),
        in_specs=[
            pl.BlockSpec((None, 1, tp),
                         lambda s, b, k: (b, 0, s * k_steps + k)),
            pl.BlockSpec((None, 1, tp),
                         lambda s, b, k: (b, 0, s * k_steps + k)),
            pl.BlockSpec((num_bins, 1), lambda s, b, k: (0, 0)),
        ],
        out_specs=pl.BlockSpec((None, None, num_bins, num_bins),
                               lambda s, b, k: (s, b, 0, 0)),
        compiler_params=pltpu.CompilerParams(
            dimension_semantics=("parallel", "parallel", "arbitrary"),
            vmem_limit_bytes=vmem_limit),
    )(x3, y3, bins2)

    # Combine the (tiny) per-split partial histograms.
    return jnp.sum(hist_parts, axis=0)


# ----------------------------------------------------------------------------
# NMI loss (mirrors NMI.forward)
# ----------------------------------------------------------------------------

def nmi_loss(x, y, *, vmin=0.0, vmax=1.0, num_bins=64, sample_ratio=0.1,
             normalised=True, sample_key=None, tile_p=4096, sample_split=1,
             window_dtype=jnp.float32):
    """x, y: (N, 1, *sizes) -> scalar (N)MI loss, matching the torch module."""
    n = x.shape[0]
    xf = x.reshape(n, -1).astype(jnp.float32)
    yf = y.reshape(n, -1).astype(jnp.float32)

    if sample_ratio < 1.0:
        # TODO(synk): random subsampling (torch.randperm + gather) stays in JAX
        # glue; a data-dependent in-kernel DMA gather is not worth it here.
        numel = xf.shape[1]
        idx_th = int(sample_ratio * numel)
        if sample_key is None:
            sample_key = jax.random.PRNGKey(0)
        idx = jax.random.permutation(sample_key, numel)[:idx_th]
        xf = jnp.take(xf, idx, axis=1)
        yf = jnp.take(yf, idx, axis=1)

    bin_width = (vmax - vmin) / num_bins
    sigma = bin_width / (2.0 * math.sqrt(2.0 * math.log(2.0)))
    win_scale = 1.0 / (math.sqrt(2.0 * math.pi) * sigma)
    bins = jnp.linspace(vmin, vmax, num_bins, dtype=jnp.float32)

    hist = parzen_joint_hist(xf, yf, bins, sigma=sigma, vmax=vmax,
                             tile_p=tile_p, sample_split=sample_split,
                             window_dtype=window_dtype)
    # Re-apply the factored-out Gaussian normalisation (win_scale on each
    # operand -> win_scale**2 on the product) BEFORE the +1e-5 epsilons so the
    # epsilons keep the same relative magnitude as the torch module.
    hist = hist * (win_scale * win_scale)

    # Tiny (N, 64, 64) post-processing — done in plain JAX.
    hist_norm = jnp.sum(hist.reshape(n, -1), axis=1) + 1e-5
    p_joint = hist / hist_norm[:, None, None]
    p_x = jnp.sum(p_joint, axis=2)
    p_y = jnp.sum(p_joint, axis=1)
    ent_x = -jnp.sum(p_x * jnp.log(p_x + 1e-5), axis=1)
    ent_y = -jnp.sum(p_y * jnp.log(p_y + 1e-5), axis=1)
    ent_joint = -jnp.sum(p_joint * jnp.log(p_joint + 1e-5), axis=(1, 2))
    if normalised:
        return -jnp.mean((ent_x + ent_y) / ent_joint)
    return -jnp.mean(ent_x + ent_y - ent_joint)


# ----------------------------------------------------------------------------
# Pure-JAX reference (direct transcription of the torch module)
# ----------------------------------------------------------------------------

def nmi_loss_reference(x, y, *, vmin=0.0, vmax=1.0, num_bins=64,
                       sample_ratio=0.1, normalised=True, sample_key=None):
    n = x.shape[0]
    xf = x.reshape(n, -1).astype(jnp.float32)
    yf = y.reshape(n, -1).astype(jnp.float32)

    if sample_ratio < 1.0:
        numel = xf.shape[1]
        idx_th = int(sample_ratio * numel)
        if sample_key is None:
            sample_key = jax.random.PRNGKey(0)
        idx = jax.random.permutation(sample_key, numel)[:idx_th]
        xf = jnp.take(xf, idx, axis=1)
        yf = jnp.take(yf, idx, axis=1)

    bin_width = (vmax - vmin) / num_bins
    sigma = bin_width / (2.0 * math.sqrt(2.0 * math.log(2.0)))
    bins = jnp.linspace(vmin, vmax, num_bins, dtype=jnp.float32).reshape(num_bins, 1)

    xb = xf[:, None, :]                                        # (N, 1, P)
    yb = yf[:, None, :]
    win_x = jnp.exp(-(xb - bins) ** 2 / (2.0 * sigma ** 2)) / (
        math.sqrt(2.0 * math.pi) * sigma)                      # (N, B, P)
    win_y = jnp.exp(-(yb - bins) ** 2 / (2.0 * sigma ** 2)) / (
        math.sqrt(2.0 * math.pi) * sigma)
    hist_joint = jnp.einsum("nbp,ncp->nbc", win_x, win_y,
                            precision=lax.Precision.HIGHEST)   # (N, B, B)

    hist_norm = jnp.sum(hist_joint.reshape(n, -1), axis=1) + 1e-5
    p_joint = hist_joint / hist_norm[:, None, None]
    p_x = jnp.sum(p_joint, axis=2)
    p_y = jnp.sum(p_joint, axis=1)
    ent_x = -jnp.sum(p_x * jnp.log(p_x + 1e-5), axis=1)
    ent_y = -jnp.sum(p_y * jnp.log(p_y + 1e-5), axis=1)
    ent_joint = -jnp.sum(p_joint * jnp.log(p_joint + 1e-5), axis=(1, 2))
    if normalised:
        return -jnp.mean((ent_x + ent_y) / ent_joint)
    return -jnp.mean(ent_x + ent_y - ent_joint)


# ----------------------------------------------------------------------------
# Main
# ----------------------------------------------------------------------------

if __name__ == "__main__":
    key = jax.random.PRNGKey(0)
    k_x, k_y, k_samp = jax.random.split(key, 3)

    # Module expects (N, 1, *sizes) intensity images in [vmin, vmax] = [0, 1].
    N, C, H, W = 2, 1, 32, 32
    x = jax.random.uniform(k_x, (N, C, H, W), dtype=jnp.float32)
    y = jnp.clip(x + 0.1 * jax.random.normal(k_y, (N, C, H, W), jnp.float32),
                 0.0, 1.0)

    # Case 1: module defaults (sample_ratio=0.1, normalised=True);
    #         exercises the sentinel-padded single-tile path.
    loss1 = jax.block_until_ready(nmi_loss(x, y, sample_key=k_samp))
    ref1 = jax.block_until_ready(nmi_loss_reference(x, y, sample_key=k_samp))
    assert jnp.allclose(loss1, ref1, rtol=1e-4, atol=1e-4), (loss1, ref1)

    # Case 2: full sampling, unnormalised MI, small tile + sample split;
    #         exercises multi-tile accumulation AND the split (v7x) path.
    loss2 = jax.block_until_ready(
        nmi_loss(x, y, sample_ratio=1.0, normalised=False,
                 tile_p=256, sample_split=2))
    ref2 = jax.block_until_ready(
        nmi_loss_reference(x, y, sample_ratio=1.0, normalised=False))
    assert jnp.allclose(loss2, ref2, rtol=1e-4, atol=1e-4), (loss2, ref2)

    # Case 3: bf16 MXU windows (v6e/v7x f32-emulation relief), f32 accumulate;
    #         looser tolerance by construction.
    loss3 = jax.block_until_ready(
        nmi_loss(x, y, sample_key=k_samp, window_dtype=jnp.bfloat16))
    assert jnp.isfinite(loss3)
    assert jnp.allclose(loss3, ref1, rtol=3e-2, atol=3e-2), (loss3, ref1)

    print("KERNEL_OK")
</pallas_src>

<mosaic_0001>
module attributes {stable_mosaic.version = 11 : i64} {
  func.func @_parzen_joint_hist_kernel(%arg0: i32, %arg1: i32, %arg2: i32, %arg3: memref<1x1x128xf32, #tpu.memory_space<vmem>>, %arg4: memref<1x1x128xf32, #tpu.memory_space<vmem>>, %arg5: memref<64x1xf32, #tpu.memory_space<vmem>>, %arg6: memref<1x1x64x64xf32, #tpu.memory_space<vmem>>) attributes {dimension_semantics = [#tpu.dimension_semantics<parallel>, #tpu.dimension_semantics<parallel>, #tpu.dimension_semantics<arbitrary>], iteration_bounds = array<i64: 1, 2, 1>, scalar_prefetch = 0 : i64, scratch_operands = 0 : i64, tpu.core_type = #tpu.core_type<tc>, window_params = [{transform_indices = @transform_0, window_bounds = array<i64: 1, 1, 128>}, {transform_indices = @transform_1, window_bounds = array<i64: 1, 1, 128>}, {pipeline_mode = #tpu.pipeline_mode<synchronous>, transform_indices = @transform_2, window_bounds = array<i64: 64, 1>}, {transform_indices = @transform_3, window_bounds = array<i64: 1, 1, 64, 64>}]} {
    %c0_i32 = arith.constant 0 : i32
    %0 = arith.cmpi eq, %arg2, %c0_i32 : i32
    %1 = arith.extui %0 : i1 to i32
    %c0_i32_0 = arith.constant 0 : i32
    %2 = arith.cmpi ne, %1, %c0_i32_0 : i32
    scf.if %2 {
      %cst_18 = arith.constant 0.000000e+00 : f32
      %29 = vector.broadcast %cst_18 : f32 to vector<64x64xf32>
      %c0_19 = arith.constant 0 : index
      %c0_20 = arith.constant 0 : index
      %c0_21 = arith.constant 0 : index
      %c0_22 = arith.constant 0 : index
      %30 = vector.load %arg6[%c0_19, %c0_20, %c0_21, %c0_22] : memref<1x1x64x64xf32, #tpu.memory_space<vmem>>, vector<1x1x64x64xf32>
      %31 = vector.shape_cast %30 : vector<1x1x64x64xf32> to vector<64x64xf32>
      %32 = vector.shape_cast %29 : vector<64x64xf32> to vector<1x1x64x64xf32>
      tpu.vector_store %arg6[%c0_19, %c0_20, %c0_21, %c0_22], %32 {strides = array<i32>} : memref<1x1x64x64xf32, #tpu.memory_space<vmem>>, vector<1x1x64x64xf32>,
    } else {
    }
    %c0 = arith.constant 0 : index
    %c0_1 = arith.constant 0 : index
    %c0_2 = arith.constant 0 : index
    %3 = vector.load %arg3[%c0, %c0_1, %c0_2] : memref<1x1x128xf32, #tpu.memory_space<vmem>>, vector<1x1x128xf32>
    %4 = vector.shape_cast %3 : vector<1x1x128xf32> to vector<1x128xf32>
    %c0_3 = arith.constant 0 : index
    %c0_4 = arith.constant 0 : index
    %c0_5 = arith.constant 0 : index
    %5 = vector.load %arg4[%c0_3, %c0_4, %c0_5] : memref<1x1x128xf32, #tpu.memory_space<vmem>>, vector<1x1x128xf32>
    %6 = vector.shape_cast %5 : vector<1x1x128xf32> to vector<1x128xf32>
    %c0_6 = arith.constant 0 : index
    %c0_7 = arith.constant 0 : index
    %7 = vector.load %arg5[%c0_6, %c0_7] : memref<64x1xf32, #tpu.memory_space<vmem>>, vector<64x1xf32>
    %8 = vector.broadcast %4 : vector<1x128xf32> to vector<64x128xf32>
    %9 = vector.broadcast %7 : vector<64x1xf32> to vector<64x128xf32>
    %10 = arith.subf %8, %9 : vector<64x128xf32>
    %11 = vector.broadcast %6 : vector<1x128xf32> to vector<64x128xf32>
    %12 = vector.broadcast %7 : vector<64x1xf32> to vector<64x128xf32>
    %13 = arith.subf %11, %12 : vector<64x128xf32>
    %14 = arith.mulf %10, %10 : vector<64x128xf32>
    %cst = arith.constant -11356.5234 : f32
    %15 = vector.broadcast %cst : f32 to vector<64x128xf32>
    %16 = arith.mulf %14, %15 : vector<64x128xf32>
    %17 = math.exp %16 : vector<64x128xf32>
    %18 = arith.mulf %13, %13 : vector<64x128xf32>
    %cst_8 = arith.constant -11356.5234 : f32
    %19 = vector.broadcast %cst_8 : f32 to vector<64x128xf32>
    %20 = arith.mulf %18, %19 : vector<64x128xf32>
    %21 = math.exp %20 : vector<64x128xf32>
    %c0_9 = arith.constant 0 : index
    %c0_10 = arith.constant 0 : index
    %c0_11 = arith.constant 0 : index
    %c0_12 = arith.constant 0 : index
    %22 = vector.load %arg6[%c0_9, %c0_10, %c0_11, %c0_12] : memref<1x1x64x64xf32, #tpu.memory_space<vmem>>, vector<1x1x64x64xf32>
    %23 = vector.shape_cast %22 : vector<1x1x64x64xf32> to vector<64x64xf32>
    %cst_13 = arith.constant dense<0.000000e+00> : vector<64x64xf32>
    %24 = tpu.matmul %17, %21, %cst_13 {dimension_numbers = #tpu.dot_dimension_numbers<[1], [1], [0], [0], [0, 0, 1, 0], [], []>} : vector<64x128xf32>, vector<64x128xf32>, vector<64x64xf32> -> vector<64x64xf32>
    %25 = arith.addf %23, %24 : vector<64x64xf32>
    %c0_14 = arith.constant 0 : index
    %c0_15 = arith.constant 0 : index
    %c0_16 = arith.constant 0 : index
    %c0_17 = arith.constant 0 : index
    %26 = vector.load %arg6[%c0_14, %c0_15, %c0_16, %c0_17] : memref<1x1x64x64xf32, #tpu.memory_space<vmem>>, vector<1x1x64x64xf32>
    %27 = vector.shape_cast %26 : vector<1x1x64x64xf32> to vector<64x64xf32>
    %28 = vector.shape_cast %25 : vector<64x64xf32> to vector<1x1x64x64xf32>
    tpu.vector_store %arg6[%c0_14, %c0_15, %c0_16, %c0_17], %28 {strides = array<i32>} : memref<1x1x64x64xf32, #tpu.memory_space<vmem>>, vector<1x1x64x64xf32>,
    return
  }
  func.func @transform_0(%arg0: i32, %arg1: i32, %arg2: i32) -> (i32, i32, i32) {
    %c1_i32 = arith.constant 1 : i32
    %0 = arith.muli %arg0, %c1_i32 : i32
    %1 = arith.addi %0, %arg2 : i32
    %c0_i32 = arith.constant 0 : i32
    %c0_i32_0 = arith.constant 0 : i32
    return %arg1, %c0_i32, %1 : i32, i32, i32
  }
  func.func @transform_1(%arg0: i32, %arg1: i32, %arg2: i32) -> (i32, i32, i32) {
    %c1_i32 = arith.constant 1 : i32
    %0 = arith.muli %arg0, %c1_i32 : i32
    %1 = arith.addi %0, %arg2 : i32
    %c0_i32 = arith.constant 0 : i32
    %c0_i32_0 = arith.constant 0 : i32
    return %arg1, %c0_i32, %1 : i32, i32, i32
  }
  func.func @transform_2(%arg0: i32, %arg1: i32, %arg2: i32) -> (i32, i32) {
    %c0_i32 = arith.constant 0 : i32
    %c0_i32_0 = arith.constant 0 : i32
    %c0_i32_1 = arith.constant 0 : i32
    return %c0_i32, %c0_i32_0 : i32, i32
  }
  func.func @transform_3(%arg0: i32, %arg1: i32, %arg2: i32) -> (i32, i32, i32, i32) {
    %c0_i32 = arith.constant 0 : i32
    %c0_i32_0 = arith.constant 0 : i32
    %c0_i32_1 = arith.constant 0 : i32
    return %arg0, %arg1, %c0_i32, %c0_i32_0 : i32, i32, i32, i32
  }
}

</mosaic_0001>

<bundles_post_ra>
// kernel: tpu_custom_call.1
= control target key start
LH: loop header
LB: loop body
LE: loop exit
PB: predicated region body
PF: predicated region fallthrough
CT: control target
= control target key end

     0   :  { %8 = vsyncpa [#allocation3], 0  ;;  %s1114_s0 = inlined_call_operand.vmem [shape: f32[2,1,128], index: 0, kind: input, shape index: {}]   ;;  %s1115_s1 = inlined_call_operand.vmem [shape: f32[2,1,128], index: 1, kind: input, shape index: {}]   ;;  %s1116_s2 = inlined_call_operand.vmem [shape: f32[64,1], index: 2, kind: input, shape index: {}]   ;;  %s1117_s3 = inlined_call_operand.hbm [shape: f32[1,2,64,64], index: 3, kind: output, shape index: {}]  }
   0x1   :  { %10 = vsyncpa [#allocation3 + $0x1], 0  ;;  %s903_s12 = smov 0   ;;  %s905_s13 = smov 0  }
   0x2   :  { %s907_s14 = smov 0   ;;  %s909_s15 = smov 0  }
   0x3   :  { %s911_s16 = smov 0   ;;  %s913_s17 = smov 0  }
   0x4 LB: > { %s623_s18 = sadd.s32 4294967295, %s876_s17   ;;  %s624_s19 = sadd.s32 4294967294, %s876_s17   ;;  %s876_s17 = sphi %s913_s17, %s16_s17   ;;  %s872_s16 = sphi %s911_s16, %s1124_s16   ;;  %s868_s15 = sphi %s909_s15, %s1123_s15   ;;  %s864_s14 = sphi %s907_s14, %s1122_s14   ;;  %s860_s13 = sphi %s905_s13, %s1121_s13   ;;  %s856_s12 = sphi %s903_s12, %s1120_s12  }
   0x5   : > { %s31_s20 = sadd.s32 1, %s872_s16  ;;  %s125_s21 = sadd.s32 1, %s864_s14 }
   0x6   : > { %p33_p0 = scmp.ge.s32.totalorder %s31_s20, 2  ;;  %p135_p1 = scmp.ne.s32.totalorder %s864_s14, %s860_s13 }
   0x7   : > { %p136_p2 = scmp.eq.s32.totalorder %s623_s18, 1  ;;  %p141_p3 = scmp.ne.s32.totalorder %s860_s13, %s856_s12 }
   0x8   : > { %s1126_s20 = smov (%p33_p0, %s31_s20), 0  ;;  %p142_p5 = scmp.eq.s32.totalorder %s624_s19, 1 }
   0x9   : > { %p943_p4 = por %p136_p2, %p135_p1  ;;  %s121_s23 = ssub.s32 %s872_s16, %s1126_s20 }
   0xa   : > { %p627_p6 = scmp.ge.s32.totalorder %s876_s17, 1  ;;  %p123_p7 = scmp.eq.s32.totalorder %s121_s23, 0 }
   0xb   : > { %p950_p8 = por %p142_p5, %p141_p3  ;;  %p185_p9 = scmp.lt.s32.totalorder %s876_s17, 3 }
   0xc   : > { %s956_s25 = scalar_select %p123_p7, %s864_s14, %s125_s21  }
   0xd   : > { %p186_p10 = pnand %p627_p6, %p185_p9 }
   0xe   : > { %v251_v0 = vld [vmem:[%s1116_s2 + $0x10] sm:$0xff] (!%p186_p10)  ;;  %v249_v1 = vld [vmem:[%s1116_s2] sm:$0xff] (!%p186_p10)  ;;  %v878_v2 = vmov (!%p186_p10), 0   ;;  %v252_v3 = vld [vmem:[%s1116_s2 + $0x18] sm:$0xff] (!%p186_p10)  ;;  %s215_s23 = sand.u32 (!%p186_p10), 1, %s860_s13   ;;  %vm238_vm0 = vcmask (!%p186_p10), 523264  }
   0xf   : > { %189 = sbr.rel (%p186_p10) target bundleno = 436 (0x1b4), region = 32  ;;  %765 = vset.pattern.permute.xlu1 (!%p186_p10), %v878_v2  ;;  %764 = vset.pattern.permute.xlu0 (!%p186_p10), %v878_v2  ;;  %v250_v4 = vld [vmem:[%s1116_s2 + $0x8] sm:$0xff] (!%p186_p10)  ;;  %v253_v6 = vld [vmem:[%s1116_s2 + $0x20] sm:$0xff] (!%p186_p10)  ;;  %v256_v7 = vld [vmem:[%s1116_s2 + $0x38] sm:$0xff] (!%p186_p10)  ;;  %s628_s26 = sshll.u32 (!%p186_p10), %s215_s23, 6  ;;  %v879_v9 = vmov (!%p186_p10), 0.0  }
  0x10   : > { %275 = vperm.xlu1 (!%p186_p10), %765, %v251_v0   ;;  %265 = vperm.xlu0 (!%p186_p10), %764, %v249_v1   ;;  %v254_v5 = vld [vmem:[%s1116_s2 + $0x28] sm:$0xff] (!%p186_p10)  ;;  %v255_v8 = vld [vmem:[%s1116_s2 + $0x30] sm:$0xff] (!%p186_p10)  ;;  %s985_s27 = scalar_lea.vmem (!%p186_p10), [#allocation2], %s628_s26  ;;  %p219_p11 = scmp.lt.s32.totalorder (!%p186_p10), %s868_s15, 1 }
  0x11   : > { %240 = vst.msk [vmem:[%s985_s27 + $0x8] sm:$0xff] (!%p186_p10), %vm238_vm0, %v879_v9  ;;  %239 = vst.msk [vmem:[%s985_s27] sm:$0xff] (!%p186_p10), %vm238_vm0, %v879_v9  ;;  %s636_s8 = sshll.u32 (!%p186_p10), %s868_s15, 10  ;;  %s535_s9 = sshll.u32 (!%p186_p10), %s985_s27, 4  ;;  %s1056_s9 = int_to_ptr.vmem [resolvable:$true] %s535_s9 }
  0x12   : > { %241 = vst.msk [vmem:[%s985_s27 + $0x10] sm:$0xff] (!%p186_p10), %vm238_vm0, %v879_v9  ;;  %242 = vst.msk [vmem:[%s985_s27 + $0x18] sm:$0xff] (!%p186_p10), %vm238_vm0, %v879_v9  ;;  %s1054_s11 = scalar_lea.hbm (!%p186_p10), %s1117_s3, %s636_s8  ;;  %s1068_s18 = scalar_lea.sflag (!%p186_p10), [#allocation3], %s215_s23 }
  0x13   : > { %243 = vst.msk [vmem:[%s985_s27 + $0x20] sm:$0xff] (!%p186_p10), %vm238_vm0, %v879_v9  ;;  %244 = vst.msk [vmem:[%s985_s27 + $0x28] sm:$0xff] (!%p186_p10), %vm238_vm0, %v879_v9  ;;  %s798_s19 = scalar_lea.vmem (!%p186_p10), %s1056_s9, 1024  ;;  %s880_s21 = smov (!%p186_p10), [#allocation2]  }
  0x14   : > { %280 = vperm.xlu1 (!%p186_p10), %765, %v252_v3   ;;  %270 = vperm.xlu0 (!%p186_p10), %764, %v250_v4   ;;  %245 = vst.msk [vmem:[%s985_s27 + $0x30] sm:$0xff] (!%p186_p10), %vm238_vm0, %v879_v9  ;;  %246 = vst.msk [vmem:[%s985_s27 + $0x38] sm:$0xff] (!%p186_p10), %vm238_vm0, %v879_v9  ;;  %p799_p12 = scmp.ne.s32.totalorder (!%p186_p10), %s1056_s9, %s798_s19  ;;  %s802_s26 = sshll.u32 (!%p186_p10), %s880_s21, 4  ;;  %s803_s26 = int_to_ptr.vmem [resolvable:$false] %s802_s26 }
  0x15   : > { %p805_p1 = scmp.lt.s32.totalorder (!%p186_p10), %s1056_s9, %s803_s26 }
  0x16   : > { %s220_s28 = scalar_select %p219_p11, %s868_s15, 1 }
  0x17   : > { %p800_p13 = pnand %p799_p12, %p943_p4 }
  0x18   : > { %290 = vperm.xlu1 %765, %v254_v5   ;;  %285 = vperm.xlu0 %764, %v253_v6   ;;  %s224_s4 = scalar_lea.vmem %s1114_s0, %s220_s28  ;;  %s232_s7 = scalar_lea.vmem %s1115_s1, %s220_s28 }
  0x19   : > { %v1011_v10 = vld [vmem:[%s224_s4] ss:$0 sm:$0xff]  ;;  %p801_p0 = pneg %p800_p13  ;;  %s804_s28 = scalar_lea.vmem %s803_s26, 2048 }
  0x1a   : > { %v630_v11 = vld [vmem:[%s232_s7] ss:$0 sm:$0xff]  ;;  %p806_p2 = scmp.lt.s32.totalorder %s804_s28, %s798_s19 }
  0x1c   : > { %300 = vperm.xlu1 %765, %v256_v7   ;;  %295 = vperm.xlu0 %764, %v255_v8   ;;  %p807_p3 = por %p806_p2, %p805_p1 }
  0x1e   : > { %p808_p5 = pnand %p807_p3, %p801_p0 }
  0x8f   : > { %v1013_v12 = vpop.permute.xlu1 %275  ;;  %v266_v13 = vpop.permute.xlu0 %265 }
  0x90   : > { %v319_v14 = vsub.f32 %v630_v11, %v1013_v12  ;;  %v303_v15 = vsub.f32 %v1011_v10, %v266_v13  ;;  %v317_v16 = vsub.f32 %v630_v11, %v266_v13  ;;  %v305_v5 = vsub.f32 %v1011_v10, %v1013_v12 }
  0x92   : > { %v359_v17 = vmul.f32 %v319_v14, %v319_v14  ;;  %v357_v18 = vmul.f32 %v317_v16, %v317_v16  ;;  %v325_v22 = vmul.f32 %v303_v15, %v303_v15 }
  0x93   : > { %v1017_v19 = vpop.permute.xlu1 %280  ;;  %v1019_v20 = vpop.permute.xlu0 %270 }
  0x94   : > { %v367_v21 = vmul.f32 -11356.523, %v359_v17  ;;  %v365_v23 = vmul.f32 -11356.523, %v357_v18  ;;  %v320_v24 = vsub.f32 %v630_v11, %v1017_v19  ;;  %v318_v25 = vsub.f32 %v630_v11, %v1019_v20 }
  0x95   : > { %v333_v31 = vmul.f32 -11356.523, %v325_v22  ;;  %v304_v7 = vsub.f32 %v1011_v10, %v1019_v20  ;;  %v306_v14 = vsub.f32 %v1011_v10, %v1017_v19 }
  0x96   : > { %v360_v26 = vmul.f32 %v320_v24, %v320_v24  ;;  %v358_v27 = vmul.f32 %v318_v25, %v318_v25  ;;  %v377_v30 = vmul.f32 1.442695, %v367_v21  ;;  %v373_v33 = vmul.f32 1.442695, %v365_v23 }
  0x97   : > { %v291_v28 = vpop.permute.xlu1 %290  ;;  %v286_v29 = vpop.permute.xlu0 %285  ;;  %v341_v44 = vmul.f32 1.442695, %v333_v31  ;;  %v326_v15 = vmul.f32 %v304_v7, %v304_v7  ;;  %v328_v22 = vmul.f32 %v306_v14, %v306_v14 }
  0x98   : > { %v322_v32 = vsub.f32 %v630_v11, %v291_v28  ;;  %v368_v34 = vmul.f32 -11356.523, %v360_v26  ;;  %v366_v35 = vmul.f32 -11356.523, %v358_v27  ;;  %v307_v39 = vsub.f32 %v1011_v10, %v286_v29 }
  0x99   : > { %766 = vpow2.f32 %v377_v30  ;;  %v321_v41 = vsub.f32 %v630_v11, %v286_v29  ;;  %v308_v8 = vsub.f32 %v1011_v10, %v291_v28  ;;  %v334_v23 = vmul.f32 -11356.523, %v326_v15 }
  0x9a   : > { %v362_v36 = vmul.f32 %v322_v32, %v322_v32  ;;  %v379_v37 = vmul.f32 1.442695, %v368_v34  ;;  %v375_v38 = vmul.f32 1.442695, %v366_v35  ;;  %768 = vpow2.f32 %v373_v33 }
  0x9b   : > { %v301_v40 = vpop.permute.xlu1 %300  ;;  %v329_v42 = vmul.f32 %v307_v39, %v307_v39  ;;  %v296_v43 = vpop.permute.xlu0 %295  ;;  %v361_v46 = vmul.f32 %v321_v41, %v321_v41  ;;  %v330_v16 = vmul.f32 %v308_v8, %v308_v8  ;;  %v336_v19 = vmul.f32 -11356.523, %v328_v22  ;;  %v394_v41 = vld [vmem:[%s985_s27 + $0x28] sm:$0xff] }
  0x9c   : > { %770 = vpow2.f32 %v379_v37  ;;  %v370_v45 = vmul.f32 -11356.523, %v362_v36  ;;  %v324_v47 = vsub.f32 %v630_v11, %v301_v40  ;;  %v323_v50 = vsub.f32 %v630_v11, %v296_v43 }
  0x9d   : > { %772 = vpow2.f32 %v375_v38  ;;  %v337_v48 = vmul.f32 -11356.523, %v329_v42  ;;  %v369_v49 = vmul.f32 -11356.523, %v361_v46  ;;  %v309_v9 = vsub.f32 %v1011_v10, %v296_v43  ;;  %v389_v42 = vld [vmem:[%s985_s27] sm:$0xff] }
  0x9e   : > { %v383_v52 = vmul.f32 1.442695, %v370_v45  ;;  %v364_v53 = vmul.f32 %v324_v47, %v324_v47  ;;  %774 = vpow2.f32 %v341_v44  ;;  %v363_v55 = vmul.f32 %v323_v50, %v323_v50  ;;  %v393_v44 = vld [vmem:[%s985_s27 + $0x20] sm:$0xff] }
  0x9f   : > { %v349_v51 = vmul.f32 1.442695, %v337_v48  ;;  %v381_v54 = vmul.f32 1.442695, %v369_v49  ;;  %v327_v11 = vmul.f32 %v305_v5, %v305_v5  ;;  %v310_v17 = vsub.f32 %v1011_v10, %v301_v40  ;;  %v390_v40 = vld [vmem:[%s985_s27 + $0x8] sm:$0xff] }
  0xa0   : > { %v372_v57 = vmul.f32 -11356.523, %v364_v53  ;;  %v371_v59 = vmul.f32 -11356.523, %v363_v55  ;;  %v331_v12 = vmul.f32 %v309_v9, %v309_v9  ;;  %v338_v24 = vmul.f32 -11356.523, %v330_v16 }
  0xa1   : > { %776 = vpow2.f32 %v349_v51  ;;  %v335_v20 = vmul.f32 -11356.523, %v327_v11  ;;  %v332_v25 = vmul.f32 %v310_v17, %v310_v17  ;;  %v343_v29 = vmul.f32 1.442695, %v334_v23  ;;  %v392_v51 = vld [vmem:[%s985_s27 + $0x18] sm:$0xff] }
  0xa2   : > { %778 = vpow2.f32 %v383_v52  ;;  %v387_v62 = vmul.f32 1.442695, %v372_v57  ;;  %v385_v0 = vmul.f32 1.442695, %v371_v59  ;;  %v339_v26 = vmul.f32 -11356.523, %v331_v12 }
  0xa3   : > { %v767_v56 = vpop.eup %766  ;;  %780 = vpow2.f32 %v381_v54  ;;  %v345_v27 = vmul.f32 1.442695, %v335_v20  ;;  %v351_v30 = vmul.f32 1.442695, %v338_v24  ;;  %v340_v31 = vmul.f32 -11356.523, %v332_v25 }
  0xa4   : > { %v769_v58 = vpop.eup %768  ;;  %782 = vpow2.f32 %v387_v62  ;;  %v353_v10 = vmul.f32 1.442695, %v339_v26  ;;  %v347_v32 = vmul.f32 1.442695, %v336_v19  ;;  %v396_v53 = vld [vmem:[%s985_s27 + $0x38] sm:$0xff]  ;;  %v391_v54 = vld [vmem:[%s985_s27 + $0x10] sm:$0xff] }
  0xa5   : > { %784 = vpow2.f32 %v385_v0  ;;  %v355_v33 = vmul.f32 1.442695, %v340_v31 }
  0xa6   : > { %v771_v60 = vpop.eup %770  ;;  %786 = vpow2.f32 %v345_v27 }
  0xa7   : > { %v773_v61 = vpop.eup %772  ;;  %v685_v1 = vpack.c.bf16 %v771_v60, %v767_v56  ;;  %788 = vpow2.f32 %v343_v29  ;;  %v395_v56 = vld [vmem:[%s985_s27 + $0x30] sm:$0xff] }
  0xa8   : > { %v681_v63 = vpack.c.bf16 %v773_v61, %v769_v58  ;;  %v775_v2 = vpop.eup %774  ;;  %790 = vpow2.f32 %v351_v30 }
  0xa9   : > { %669 = vmatprep.mubr.f32.mxu0 %v775_v2  ;;  %792 = vpow2.f32 %v353_v10 }
  0xaa   : > { %682 = vmatprep.subr.bf16.mxu0 %v681_v63  ;;  %697 = vmatprep.subr.bf16.mxu1 %v681_v63  ;;  %794 = vpow2.f32 %v347_v32 }
  0xab   : > { %v777_v3 = vpop.eup %776  ;;  %684 = vmatpush3.bf16.xpose.msra.mxu0 %v681_v63  ;;  %701 = vmatpush3.bf16.xpose.msra.mxu1 %v681_v63  ;;  %796 = vpow2.f32 %v355_v33 }
  0xac   : > { %675 = vmatprep.mubr.f32.mxu1 %v777_v3  ;;  %686 = vmatprep.subr.bf16.mxu0 %v685_v1  ;;  %v779_v4 = vpop.eup %778 }
  0xad   : > { %698 = vmatprep.subr.bf16.mxu1 %v685_v1  ;;  %v781_v6 = vpop.eup %780 }
  0xae   : > { %v689_v13 = vpack.c.bf16 %v779_v4, %v781_v6  ;;  %v783_v18 = vpop.eup %782 }
  0xaf   : > { %v785_v21 = vpop.eup %784 }
  0xb0   : > { %v693_v28 = vpack.c.bf16 %v783_v18, %v785_v21  ;;  %v787_v34 = vpop.eup %786 }
  0xb1   : > { %v789_v35 = vpop.eup %788 }
  0xb2   : > { %v791_v36 = vpop.eup %790 }
  0xb3   : > { %688 = vmatpush3.bf16.xpose.msra.mxu0 %v685_v1  ;;  %702 = vmatpush3.bf16.xpose.msra.mxu1 %v685_v1  ;;  %v793_v37 = vpop.eup %792 }
  0xb4   : > { %690 = vmatprep.subr.bf16.mxu0 %v689_v13  ;;  %699 = vmatprep.subr.bf16.mxu1 %v689_v13  ;;  %v795_v38 = vpop.eup %794 }
  0xb5   : > { %v797_v39 = vpop.eup %796 }
  0xbb   : > { %692 = vmatpush3.bf16.xpose.msra.mxu0 %v689_v13  ;;  %703 = vmatpush3.bf16.xpose.msra.mxu1 %v689_v13 }
  0xbc   : > { %694 = vmatprep.subr.bf16.mxu0 %v693_v28  ;;  %700 = vmatprep.subr.bf16.mxu1 %v693_v28 }
  0xc3   : > { %696 = vmatpush3.bf16.xpose.msra.mxu0 %v693_v28  ;;  %704 = vmatpush3.bf16.xpose.msra.mxu1 %v693_v28 }
  0xca   : > { %670 = vmatmul.mubr.f32.vlgmr.msra.gmra.mrb[0].mxu0 %v789_v35  ;;  %676 = vmatmul.mubr.f32.vlgmr.msra.gmra.mrb[0].mxu1 %v791_v36 }
  0xcb   : > { %672 = vmatprep.mubr.f32.mxu0 %v787_v34  ;;  %678 = vmatprep.mubr.f32.mxu1 %v793_v37 }
  0xce   : > { %673 = vmatmul.mubr.f32.gmra.mrb[2].mxu0 %v795_v38  ;;  %679 = vmatmul.mubr.f32.gmra.mrb[2].mxu1 %v797_v39 }
 0x19d   : > { %v671_v43 = vpop.f32.mrb[0].mxu0  ;;  %v677_v46 = vpop.f32.mrb[0].mxu1 }
 0x19e   : > { %v503_v45 = vadd.f32 %v671_v43, %v390_v40  ;;  %v463_v47 = vpop.f32.mrb[1].mxu0  ;;  %v507_v48 = vadd.f32 %v677_v46, %v394_v41  ;;  %v483_v50 = vpop.f32.mrb[1].mxu1 }
 0x19f   : > { %v502_v49 = vadd.f32 %v463_v47, %v389_v42  ;;  %v506_v52 = vadd.f32 %v483_v50, %v393_v44 }
 0x1a0   : > { %512 = vst.msk [vmem:[%s985_s27 + $0x8] sm:$0xff] %vm238_vm0, %v503_v45  ;;  %516 = vst.msk [vmem:[%s985_s27 + $0x28] sm:$0xff] %vm238_vm0, %v507_v48 }
 0x1a1   : > { %511 = vst.msk [vmem:[%s985_s27] sm:$0xff] %vm238_vm0, %v502_v49  ;;  %v674_v55 = vpop.f32.mrb[2].mxu0  ;;  %515 = vst.msk [vmem:[%s985_s27 + $0x20] sm:$0xff] %vm238_vm0, %v506_v52  ;;  %v680_v58 = vpop.f32.mrb[2].mxu1 }
 0x1a2   : > { %v505_v57 = vadd.f32 %v674_v55, %v392_v51  ;;  %v473_v59 = vpop.f32.mrb[3].mxu0  ;;  %v509_v60 = vadd.f32 %v680_v58, %v396_v53  ;;  %v493_v62 = vpop.f32.mrb[3].mxu1 }
 0x1a3   : > { %v504_v61 = vadd.f32 %v473_v59, %v391_v54  ;;  %v508_v63 = vadd.f32 %v493_v62, %v395_v56 }
 0x1a4   : > { %514 = vst.msk [vmem:[%s985_s27 + $0x18] sm:$0xff] %vm238_vm0, %v505_v57  ;;  %518 = vst.msk [vmem:[%s985_s27 + $0x38] sm:$0xff] %vm238_vm0, %v509_v60 }
 0x1a5   : > { %513 = vst.msk [vmem:[%s985_s27 + $0x10] sm:$0xff] %vm238_vm0, %v504_v61  ;;  %517 = vst.msk [vmem:[%s985_s27 + $0x30] sm:$0xff] %vm238_vm0, %v508_v63 }
 0x1a6   : > { %811 = shalt.err (!%p808_p5)
}
 0x1a7   : > { %s812_s23 = scalar_lea.hbm %s1054_s11, 1024  ;;  %s816_s30 = scalar_lea.hbm %s1117_s3, 2048 }
 0x1a8   : > { %p813_p6 = scmp.ne.s32.totalorder %s1054_s11, %s812_s23  ;;  %p817_p10 = scmp.lt.u32.totalorder %s1054_s11, %s1117_s3 }
 0x1a9   : > { %p818_p11 = scmp.lt.u32.totalorder %s816_s30, %s812_s23  ;;  %p820_p13 = scmp.lt.u32.totalorder %s812_s23, %s1054_s11 }
 0x1aa   : > { %p814_p7 = pnand %p813_p6, %p943_p4 }
 0x1ab   : > { %p819_p12 = por %p818_p11, %p817_p10 }
 0x1ac   : > { %p815_p9 = pneg %p814_p7 }
 0x1ad   : > { %p821_p0 = por %p820_p13, %p819_p12 }
 0x1af   : > { %p822_p1 = pnand %p821_p0, %p815_p9 }
 0x1b1   : > { %825 = shalt.err (!%p822_p1)
}
 0x1b2   : > { %s881_s6 = smov 128   ;;  %s882_s7 = smov 8  }
 0x1b3   : > { %705 = dma.vmem_to_hbm [thread:$0]  (%p943_p4), %s1056_s9, 1024, %s1054_s11, %s1068_s18, %s881_s6, %s881_s6, %s882_s7  }
 0x1b4 PF: > { %p711_p2 = scmp.ge.s32.totalorder %s876_s17, 2  ;;  %s550_s8 = sand.u32 1, %s856_s12  }
 0x1b5   : > { %s551_s15 = scalar_lea.sflag [#allocation3], %s550_s8 }
 0x1b6   : > { %p708_p3 = pnand %p711_p2, %p950_p8 }
 0x1b8   : > { %851 = dma.done.wait (!%p708_p3), %s551_s15, 1024  }
 0x1b9   : > { %853 = vsyncadd (!%p708_p3), %s551_s15, 4294966272  ;;  %s16_s17 = sadd.s32 1, %s876_s17   ;;  %s1120_s12 = smov %s860_s13 }
 0x1ba   : > { %p13_p5 = scmp.ge.s32.totalorder %s16_s17, 4   ;;  %s1121_s13 = smov %s864_s14 }
 0x1bb   : > { %s1122_s14 = smov %s956_s25  ;;  %s1123_s15 = smov %s872_s16 }
 0x1bc   : > { %s1124_s16 = smov %s1126_s20  ;;  %15 = sbr.rel (!%p13_p5) target bundleno = 4 (0x4), region = 74 }
 0x1c3   :  { %556 = vsyncpa [#allocation3], 1 }
 0x1c4   :  { %558 = vsyncpa [#allocation3 + $0x1], 1 }

</bundles_post_ra>
